<compile_context>
chip_gen: v6e
topology: v6e:2x2x1
jax: 0.10.0
libtpu: 0.0.40
codegen_flags: <defaults>
</compile_context>

<pallas_src>
import functools
import math

import jax
import jax.numpy as jnp
from jax.experimental import pallas as pl
from jax.experimental.pallas import tpu as pltpu


_SUBLANE_PACK = {4: 8, 2: 16, 1: 32}  # itemsize -> native sublane pack


def _round_up(x: int, mult: int) -> int:
    return ((x + mult - 1) // mult) * mult


def _vmem_capacity_bytes() -> int:
    """Physical VMEM per TensorCore; conservative fallback if unavailable."""
    try:
        info = pltpu.get_tpu_info()
        cap = getattr(info, "vmem_capacity_bytes", None)
        if cap:
            return int(cap)
    except Exception:
        pass
    return 64 * 1024 * 1024  # v7x per-TC size (most restrictive)


def _choose_tiling(rows: int, n: int, k: int, dtype) -> tuple[int, int]:
    """Returns (tile_rows, vmem_limit_bytes), generation-aware."""
    itemsize = jnp.dtype(dtype).itemsize
    sublane = _SUBLANE_PACK.get(itemsize, 8)
    rows_pad = _round_up(rows, sublane)
    row_in_bytes = n * itemsize

    cap = _vmem_capacity_bytes()
    if cap >= 128 * 1024 * 1024:          # v5e / v6e: 128 MiB physical VMEM
        alloc_budget = 48 * 1024 * 1024
        vmem_limit = 96 * 1024 * 1024
    else:                                  # v7x: 64 MiB per TensorCore
        alloc_budget = 36 * 1024 * 1024
        vmem_limit = 52 * 1024 * 1024

    k_lanes = _round_up(k, 128)           # lane padding of output / accumulator
    # Per-row VMEM bytes across all per-step allocations:
    #   2x input tile buffers + 2x output buffers (lane padded) + f32 acc temp.
    per_row = 2 * row_in_bytes + 2 * k_lanes * itemsize + k_lanes * 4
    if jnp.dtype(dtype) == jnp.float32:
        # bf16x3 split temporaries (3 bf16 copies + f32 residuals), conservative.
        per_row += 16 * n
    # Resident grouping matrix (same block every step, 2 buffers, lane padded).
    g_itemsize = 2 if jnp.dtype(dtype) == jnp.float32 else itemsize
    fixed = 2 * n * k_lanes * g_itemsize

    t = max(sublane, (alloc_budget - fixed) // max(per_row, 1))
    t = min(t, 8192, rows_pad)
    t = max(sublane, (t // sublane) * sublane)

    # Megacore: aim for >= 4 grid steps so a 2-TC chip (v7x) splits the
    # "parallel" axis non-degenerately; keep tiles >= ~512 KiB to amortize the
    # per-step pipeline overhead.
    min_grid = 4
    if -(-rows_pad // t) < min_grid:
        split_t = _round_up(-(-rows_pad // min_grid), sublane)
        floor_rows = max(sublane, (512 * 1024) // max(row_in_bytes, 1))
        floor_t = min(rows_pad, _round_up(floor_rows, sublane))
        t = min(t, max(split_t, floor_t))
        t = max(t, sublane)

    if t >= rows:
        # Single block covering every row; block dim == array dim is always legal.
        t = rows
    return t, vmem_limit


def _groupsum_kernel(x_ref, g_ref, o_ref, *, inv_tau: float, split_f32: bool):
    x = x_ref[...]          # (TILE_R, N)
    g = g_ref[...]          # (N, k), exact 0/1, resident in VMEM

    if split_f32:
        # Exact-to-f32 grouped sum using only bf16 MXU passes:
        # x = x0 + x1 + x2 with each component representable in bf16; G is
        # exactly 0/1 in bf16, so every partial product is exact and the f32
        # accumulation keeps the result within ~2^-24 of a true f32 sum.
        x0 = x.astype(jnp.bfloat16)
        r1 = x - x0.astype(jnp.float32)
        x1 = r1.astype(jnp.bfloat16)
        x2 = (r1 - x1.astype(jnp.float32)).astype(jnp.bfloat16)
        acc = jnp.dot(x0, g, preferred_element_type=jnp.float32)
        acc = acc + jnp.dot(x1, g, preferred_element_type=jnp.float32)
        acc = acc + jnp.dot(x2, g, preferred_element_type=jnp.float32)
    else:
        acc = jnp.dot(x, g, preferred_element_type=jnp.float32)

    o_ref[...] = (acc * inv_tau).astype(o_ref.dtype)


def group_sum(x: jax.Array, k: int, tau: float = 1.0) -> jax.Array:
    """Pallas TPU implementation of GroupSum.forward.

    out = x.reshape(*lead, k, n // k).sum(-1) / tau
    (implemented as sum * (1/tau); differs from a true divide by <= 1 ulp).
    """
    assert x.shape[-1] % k == 0, f"{x.shape} not divisible by k={k}"
    n = x.shape[-1]
    m = n // k
    lead = x.shape[:-1]
    rows = math.prod(lead) if lead else 1
    x2 = x.reshape(rows, n)

    split_f32 = jnp.dtype(x.dtype) == jnp.float32
    g_dtype = jnp.bfloat16 if split_f32 else x.dtype
    # Block-diagonal grouping matrix: G[j, c] = 1 iff j // m == c (exact 0/1).
    g = jnp.repeat(jnp.eye(k, dtype=g_dtype), m, axis=0)  # (n, k)

    tile_r, vmem_limit = _choose_tiling(rows, n, k, x.dtype)
    grid = (pl.cdiv(rows, tile_r),)

    itemsize = jnp.dtype(x.dtype).itemsize
    passes = 3 if split_f32 else 1
    cost = pl.CostEstimate(
        flops=passes * 2 * rows * n * k,
        transcendentals=0,
        bytes_accessed=(rows * n * itemsize
                        + n * k * jnp.dtype(g_dtype).itemsize
                        + rows * k * itemsize),
    )

    out2 = pl.pallas_call(
        functools.partial(_groupsum_kernel,
                          inv_tau=1.0 / float(tau),
                          split_f32=split_f32),
        out_shape=jax.ShapeDtypeStruct((rows, k), x.dtype),
        grid=grid,
        in_specs=[
            # Row tile of the input, streamed / double-buffered by Pallas.
            pl.BlockSpec((tile_r, n), lambda i: (i, 0)),
            # Grouping matrix: same block every step -> stays resident in VMEM.
            pl.BlockSpec((n, k), lambda i: (0, 0)),
        ],
        out_specs=pl.BlockSpec((tile_r, k), lambda i: (i, 0)),
        compiler_params=pltpu.CompilerParams(
            dimension_semantics=("parallel",),
            vmem_limit_bytes=vmem_limit,
        ),
        cost_estimate=cost,
    )(x2, g)

    return out2.reshape(*lead, k)


if __name__ == "__main__":
    key = jax.random.PRNGKey(0)
    # Module has no weights; just an input.  Exercise multiple leading dims.
    batch, extra, n = 2, 4, 256
    k, tau = 16, 2.5
    x = jax.random.normal(key, (batch, extra, n), dtype=jnp.float32)

    out = jax.block_until_ready(group_sum(x, k=k, tau=tau))

    # Pure-JAX reference (mirrors the PyTorch forward exactly).
    ref = x.reshape(batch, extra, k, n // k).sum(-1) / tau

    assert out.shape == (batch, extra, k), out.shape
    assert jnp.allclose(out, ref, atol=1e-5, rtol=1e-5), "mismatch vs reference"
    print("KERNEL_OK")
</pallas_src>

<mosaic_0001>
module attributes {stable_mosaic.version = 11 : i64} {
  func.func @_groupsum_kernel(%arg0: i32, %arg1: memref<8x256xf32, #tpu.memory_space<vmem>>, %arg2: memref<256x16xbf16, #tpu.memory_space<vmem>>, %arg3: memref<8x16xf32, #tpu.memory_space<vmem>>) attributes {dimension_semantics = [#tpu.dimension_semantics<parallel>], iteration_bounds = array<i64: 1>, scalar_prefetch = 0 : i64, scratch_operands = 0 : i64, tpu.core_type = #tpu.core_type<tc>, window_params = [{transform_indices = @transform_0, window_bounds = array<i64: 8, 256>}, {pipeline_mode = #tpu.pipeline_mode<synchronous>, transform_indices = @transform_1, window_bounds = array<i64: 256, 16>}, {transform_indices = @transform_2, window_bounds = array<i64: 8, 16>}]} {
    %c0 = arith.constant 0 : index
    %c0_0 = arith.constant 0 : index
    %0 = vector.load %arg1[%c0, %c0_0] : memref<8x256xf32, #tpu.memory_space<vmem>>, vector<8x256xf32>
    %c0_1 = arith.constant 0 : index
    %c0_2 = arith.constant 0 : index
    %1 = vector.load %arg2[%c0_1, %c0_2] : memref<256x16xbf16, #tpu.memory_space<vmem>>, vector<256x16xbf16>
    %2 = arith.truncf %0 : vector<8x256xf32> to vector<8x256xbf16>
    %3 = arith.extf %2 : vector<8x256xbf16> to vector<8x256xf32>
    %4 = arith.subf %0, %3 : vector<8x256xf32>
    %5 = arith.truncf %4 : vector<8x256xf32> to vector<8x256xbf16>
    %6 = arith.extf %5 : vector<8x256xbf16> to vector<8x256xf32>
    %7 = arith.subf %4, %6 : vector<8x256xf32>
    %8 = arith.truncf %7 : vector<8x256xf32> to vector<8x256xbf16>
    %cst = arith.constant dense<0.000000e+00> : vector<8x16xf32>
    %9 = tpu.matmul %2, %1, %cst {dimension_numbers = #tpu.dot_dimension_numbers<[1], [0], [0], [1], [0, 0, 1, 1], [], []>} : vector<8x256xbf16>, vector<256x16xbf16>, vector<8x16xf32> -> vector<8x16xf32>
    %cst_3 = arith.constant dense<0.000000e+00> : vector<8x16xf32>
    %10 = tpu.matmul %5, %1, %cst_3 {dimension_numbers = #tpu.dot_dimension_numbers<[1], [0], [0], [1], [0, 0, 1, 1], [], []>} : vector<8x256xbf16>, vector<256x16xbf16>, vector<8x16xf32> -> vector<8x16xf32>
    %11 = arith.addf %9, %10 : vector<8x16xf32>
    %cst_4 = arith.constant dense<0.000000e+00> : vector<8x16xf32>
    %12 = tpu.matmul %8, %1, %cst_4 {dimension_numbers = #tpu.dot_dimension_numbers<[1], [0], [0], [1], [0, 0, 1, 1], [], []>} : vector<8x256xbf16>, vector<256x16xbf16>, vector<8x16xf32> -> vector<8x16xf32>
    %13 = arith.addf %11, %12 : vector<8x16xf32>
    %cst_5 = arith.constant 4.000000e-01 : f32
    %14 = vector.broadcast %cst_5 : f32 to vector<8x16xf32>
    %15 = arith.mulf %13, %14 : vector<8x16xf32>
    %c0_6 = arith.constant 0 : index
    %c0_7 = arith.constant 0 : index
    %16 = vector.load %arg3[%c0_6, %c0_7] : memref<8x16xf32, #tpu.memory_space<vmem>>, vector<8x16xf32>
    tpu.vector_store %arg3[%c0_6, %c0_7], %15 {strides = array<i32>} : memref<8x16xf32, #tpu.memory_space<vmem>>, vector<8x16xf32>,
    return
  }
  func.func @transform_0(%arg0: i32) -> (i32, i32) {
    %c0_i32 = arith.constant 0 : i32
    %c0_i32_0 = arith.constant 0 : i32
    return %arg0, %c0_i32 : i32, i32
  }
  func.func @transform_1(%arg0: i32) -> (i32, i32) {
    %c0_i32 = arith.constant 0 : i32
    %c0_i32_0 = arith.constant 0 : i32
    %c0_i32_1 = arith.constant 0 : i32
    return %c0_i32, %c0_i32_0 : i32, i32
  }
  func.func @transform_2(%arg0: i32) -> (i32, i32) {
    %c0_i32 = arith.constant 0 : i32
    %c0_i32_0 = arith.constant 0 : i32
    return %arg0, %c0_i32 : i32, i32
  }
}

</mosaic_0001>

<bundles_post_ra>
// kernel: tpu_custom_call.1
= control target key start
LH: loop header
LB: loop body
LE: loop exit
PB: predicated region body
PF: predicated region fallthrough
CT: control target
= control target key end

     0   :  { %s504_s0 = inlined_call_operand.vmem [shape: f32[8,256], index: 0, kind: input, shape index: {}]   ;;  %s505_s1 = inlined_call_operand.vmem [shape: bf16[256,16], index: 1, kind: input, shape index: {}]   ;;  %s506_s2 = inlined_call_operand.hbm [shape: f32[8,16], index: 2, kind: output, shape index: {}]  }
   0x1   :  { %v435_v0 = vld [vmem:[%s505_s1 + $0x78] sm:$0xff]   ;;  %v447_v2 = vld [vmem:[%s505_s1 + $0x70] sm:$0xff]   ;;  %v382_v4 = vld [vmem:[%s505_s1 + $0x68] sm:$0xff]  }
   0x2   :  { %v440_v1 = vld [vmem:[%s505_s1 + $0x38] sm:$0xff]   ;;  %311 = vmatprep.subr.bf16.mxu0 %v435_v0  ;;  %333 = vmatprep.subr.bf16.mxu1 %v435_v0  ;;  %v381_v3 = vld [vmem:[%s505_s1 + $0x30] sm:$0xff]   ;;  %v383_v5 = vld [vmem:[%s505_s1 + $0x28] sm:$0xff]  }
   0x3   :  { %312 = vmatpush3.bf16.msra.mxu0 %v440_v1  ;;  %334 = vmatpush3.bf16.msra.mxu1 %v440_v1  ;;  %v384_v6 = vld [vmem:[%s505_s1 + $0x60] sm:$0xff]   ;;  %v386_v8 = vld [vmem:[%s505_s1 + $0x58] sm:$0xff]   ;;  %v388_v10 = vld [vmem:[%s505_s1 + $0x50] sm:$0xff]  }
   0x4   :  { %313 = vmatprep.subr.bf16.mxu0 %v447_v2  ;;  %335 = vmatprep.subr.bf16.mxu1 %v447_v2  ;;  %v385_v7 = vld [vmem:[%s505_s1 + $0x20] sm:$0xff]   ;;  %v387_v9 = vld [vmem:[%s505_s1 + $0x18] sm:$0xff]   ;;  %v14_v11 = vld [vmem:[%s504_s0 + $0x8] sm:$0xff] }
   0x5   :  { %v13_v12 = vld [vmem:[%s504_s0] sm:$0xff] }
   0x7   :  { %314 = vmatpush3.bf16.msra.mxu0 %v381_v3  ;;  %336 = vmatpush3.bf16.msra.mxu1 %v381_v3 }
   0x8   :  { %315 = vmatprep.subr.bf16.mxu0 %v382_v4  ;;  %337 = vmatprep.subr.bf16.mxu1 %v382_v4 }
   0xb   :  { %316 = vmatpush3.bf16.msra.mxu0 %v383_v5  ;;  %338 = vmatpush3.bf16.msra.mxu1 %v383_v5 }
   0xc   :  { %317 = vmatprep.subr.bf16.mxu0 %v384_v6  ;;  %339 = vmatprep.subr.bf16.mxu1 %v384_v6 }
   0xf   :  { %318 = vmatpush3.bf16.msra.mxu0 %v385_v7  ;;  %340 = vmatpush3.bf16.msra.mxu1 %v385_v7 }
  0x10   :  { %319 = vmatprep.subr.bf16.mxu0 %v386_v8  ;;  %341 = vmatprep.subr.bf16.mxu1 %v386_v8 }
  0x11   :  { %7 = vsyncpa [#allocation3], 0  ;;  %v48_v13 = vpack.c.bf16 %v14_v11, %v14_v11  ;;  %v47_v14 = vpack.c.bf16 %v13_v12, %v13_v12  ;;  %v389_v15 = vld [vmem:[%s505_s1 + $0x10] sm:$0xff]   ;;  %v390_v17 = vld [vmem:[%s505_s1 + $0x48] sm:$0xff]   ;;  %vm279_vm0 = vcmask 130048  }
  0x12   :  { %v391_v20 = vld [vmem:[%s505_s1 + $0x8] sm:$0xff]   ;;  %v392_v22 = vld [vmem:[%s505_s1 + $0x40] sm:$0xff]  }
  0x13   :  { %320 = vmatpush3.bf16.msra.mxu0 %v387_v9  ;;  %342 = vmatpush3.bf16.msra.mxu1 %v387_v9  ;;  %v50_v16 = vunpack.c.l.bf16 %v48_v13  ;;  %v49_v19 = vunpack.c.l.bf16 %v47_v14  ;;  %v393_v25 = vld [vmem:[%s505_s1] sm:$0xff]   ;;  %s416_s1 = smov [#allocation2]  }
  0x14   :  { %321 = vmatprep.subr.bf16.mxu0 %v388_v10  ;;  %343 = vmatprep.subr.bf16.mxu1 %v388_v10  ;;  %s287_s16 = sshll.u32 %s416_s1, 4  ;;  %s288_s16 = int_to_ptr.vmem [resolvable:$true] %s287_s16 }
  0x15   :  { %v52_v18 = vsub.f32 %v14_v11, %v50_v16  ;;  %229 = vmatprep.mubr.bf16.mxu1 %v48_v13  ;;  %v51_v24 = vsub.f32 %v13_v12, %v49_v19  ;;  %s394_s17 = scalar_lea.vmem %s288_s16, 128  ;;  %p399_p1 = scmp.lt.s32.totalorder %s288_s16, %s288_s16 }
  0x16   :  { %p395_p0 = scmp.ne.s32.totalorder %s288_s16, %s394_s17  ;;  %p400_p2 = scmp.lt.s32.totalorder %s394_s17, %s394_s17 }
  0x17   :  { %322 = vmatpush3.bf16.msra.mxu0 %v389_v15  ;;  %344 = vmatpush3.bf16.msra.mxu1 %v389_v15  ;;  %v54_v21 = vpack.c.bf16 %v52_v18, %v52_v18  ;;  %v53_v27 = vpack.c.bf16 %v51_v24, %v51_v24 }
  0x18   :  { %323 = vmatprep.subr.bf16.mxu0 %v390_v17  ;;  %345 = vmatprep.subr.bf16.mxu1 %v390_v17  ;;  %p401_p3 = por %p400_p2, %p399_p1 }
  0x19   :  { %v56_v23 = vunpack.c.l.bf16 %v54_v21  ;;  %189 = vmatprep.mubr.bf16.mxu0 %v54_v21  ;;  %v55_v29 = vunpack.c.l.bf16 %v53_v27 }
  0x1a   :  { %p402_p4 = pnand %p401_p3, %p395_p0 }
  0x1b   :  { %324 = vmatpush3.bf16.msra.mxu0 %v391_v20  ;;  %346 = vmatpush3.bf16.msra.mxu1 %v391_v20  ;;  %v58_v26 = vsub.f32 %v52_v18, %v56_v23  ;;  %v57_v30 = vsub.f32 %v51_v24, %v55_v29 }
  0x1c   :  { %325 = vmatprep.subr.bf16.mxu0 %v392_v22  ;;  %347 = vmatprep.subr.bf16.mxu1 %v392_v22 }
  0x1d   :  { %v60_v28 = vpack.c.bf16 %v58_v26, %v58_v26  ;;  %v59_v31 = vpack.c.bf16 %v57_v30, %v57_v30 }
  0x1f   :  { %326 = vmatpush3.bf16.msra.mxu0 %v393_v25  ;;  %348 = vmatpush3.bf16.msra.mxu1 %v393_v25 }
  0x20   :  { %355 = vmatprep.subr.bf16.mxu0 %v435_v0 }
  0x22   :  { %190 = vmatmul.mubr.bf16.vlgmr.msra.gmra.mxu0 %v53_v27  ;;  %230 = vmatmul.mubr.bf16.vlgmr.msra.gmra.mxu1 %v47_v14 }
  0x23   :  { %356 = vmatpush3.bf16.msra.mxu0 %v440_v1  ;;  %269 = vmatprep.mubr.bf16.mxu0 %v60_v28 }
  0x24   :  { %357 = vmatprep.subr.bf16.mxu0 %v447_v2 }
  0x27   :  { %358 = vmatpush3.bf16.msra.mxu0 %v381_v3 }
  0x28   :  { %359 = vmatprep.subr.bf16.mxu0 %v382_v4 }
  0x2b   :  { %360 = vmatpush3.bf16.msra.mxu0 %v383_v5 }
  0x2c   :  { %361 = vmatprep.subr.bf16.mxu0 %v384_v6 }
  0x2f   :  { %362 = vmatpush3.bf16.msra.mxu0 %v385_v7 }
  0x30   :  { %363 = vmatprep.subr.bf16.mxu0 %v386_v8 }
  0x33   :  { %364 = vmatpush3.bf16.msra.mxu0 %v387_v9 }
  0x34   :  { %365 = vmatprep.subr.bf16.mxu0 %v388_v10 }
  0x37   :  { %366 = vmatpush3.bf16.msra.mxu0 %v389_v15 }
  0x38   :  { %367 = vmatprep.subr.bf16.mxu0 %v390_v17 }
  0x3b   :  { %368 = vmatpush3.bf16.msra.mxu0 %v391_v20 }
  0x3c   :  { %369 = vmatprep.subr.bf16.mxu0 %v392_v22 }
  0x3f   :  { %370 = vmatpush3.bf16.msra.mxu0 %v393_v25 }
  0x42   :  { %270 = vmatmul.mubr.bf16.vlgmr.msra.gmra.mxu0 %v59_v31 }
  0xe2   :  { %v327_v32 = vpop.f32.mrf.mxu0  ;;  %v349_v33 = vpop.f32.mrf.mxu1 }
  0xe4   :  { %v328_v34 = vpop.f32.mrf.mxu0  ;;  %v350_v35 = vpop.f32.mrf.mxu1 }
  0xe5   :  { %v329_v40 = vadd.f32 %v328_v34, %v327_v32  ;;  %v351_v41 = vadd.f32 %v350_v35, %v349_v33 }
  0xe6   :  { %v330_v36 = vpop.f32.mrf.mxu0  ;;  %v352_v37 = vpop.f32.mrf.mxu1 }
  0xe7   :  { %v232_v44 = vadd.f32 %v351_v41, %v329_v40 }
  0xe8   :  { %v331_v38 = vpop.f32.mrf.mxu0  ;;  %v353_v39 = vpop.f32.mrf.mxu1 }
 0x102   :  { %v371_v42 = vpop.f32.mrf.mxu0 }
 0x104   :  { %v372_v43 = vpop.f32.mrf.mxu0 }
 0x105   :  { %v373_v45 = vadd.f32 %v372_v43, %v371_v42 }
 0x106   :  { %v374_v46 = vpop.f32.mrf.mxu0 }
 0x107   :  { %v277_v47 = vadd.f32 %v373_v45, %v232_v44 }
 0x108   :  { %v375_v48 = vpop.f32.mrf.mxu0 }
 0x109   :  { %v278_v49 = vmul.f32 0.4, %v277_v47 }
 0x10b   :  { %280 = vst.msk [vmem:[#allocation2] sm:$0xff] %vm279_vm0, %v278_v49 }
 0x10c   :  { %405 = shalt.err (!%p402_p4)
}
 0x10d   :  { %290 = dma.vmem_to_hbm [thread:$0]  %s288_s16, 128, %s506_s2, [#allocation3]  }
 0x10e   :  { %414 = dma.done.wait [#allocation3], 128  }
 0x10f   :  { %415 = vsyncadd [#allocation3], 4294967168 }
 0x110   :  { %294 = vsyncpa [#allocation3], 1 }

</bundles_post_ra>
